<compile_context>
chip_gen: v7x
topology: tpu7x:2x2x1
jax: 0.10.0
libtpu: 0.0.40
codegen_flags: <defaults>
</compile_context>

<pallas_src>
import jax
import jax.numpy as jnp
from jax.experimental import pallas as pl
from jax.experimental.pallas import tpu as pltpu

EPS = 1e-6        # torch.nn.functional.pairwise_distance default eps
LANES = 128       # one vreg lane-block per coordinate (x / y / z and u / v)
_TB_ALIGN = 16    # batch-tile alignment (covers f32 (8,128) and bf16 (16,128) sublane tiling)
_TB_MAX = 1024    # review: 512-1024 amortizes per-step overhead; VMEM stays ~3-4 MB double-buffered


def _round_up(x, m):
    return ((x + m - 1) // m) * m


def _choose_tiling(B):
    """Pick (TB, B_pad).  Big tiles amortize the fixed per-step overhead; for large B keep an
    even number of grid steps so the 'parallel' batch axis splits evenly across v7x's 2 TCs."""
    if B <= 2 * _TB_ALIGN:                        # tiny problems: one step, minimal padding
        TB = _round_up(B, _TB_ALIGN)
        return TB, TB
    g = max(2, -(-B // _TB_MAX))                  # >= 2 steps, each <= _TB_MAX samples
    g += g & 1                                    # even step count (v7x megacore balance)
    TB = _round_up(-(-B // g), _TB_ALIGN)
    return TB, _round_up(B, TB)


def _reproj_loss_kernel(w_ref, b_ref, params_ref, target_ref, out_ref):
    """One grid step = one batch tile of TB samples.

    w_ref      : VMEM (D, 384) bf16  lane-padded regressor [x | y | z]; x/y columns pre-scaled by
                 focal * sqrt(counts_j), counts_j = multiplicity of joint j in target_indexes
    b_ref      : VMEM (1, 384) f32   matching offsets; padded z lanes = 1 (keeps inv_z finite)
    params_ref : VMEM (TB, D)        IK parameter tile (f32 or bf16)
    target_ref : VMEM (TB, 256) f32  packed targets [u'(128) | v'(128)], t' = sqrt(counts)*(t-c-EPS);
                 conf_u / conf_v stashed in lane 127 of the u / v block
    out_ref    : VMEM (TB, 1)  f32   per-sample confidence-weighted reprojection distance
    """
    # --- 1. joint regression on the MXU (bf16 inputs, f32 accumulation) --------------------
    joints = jnp.dot(params_ref[...].astype(jnp.bfloat16), w_ref[...],
                     preferred_element_type=jnp.float32) + b_ref[...]        # (TB, 384) f32
    xs = joints[:, 0 * LANES:1 * LANES]          # = f*sqrt(counts)*x   (lane-aligned slices)
    ys = joints[:, 1 * LANES:2 * LANES]          # = f*sqrt(counts)*y
    z = joints[:, 2 * LANES:3 * LANES]

    # --- 2. pinhole projection + keypoint selection, all constants pre-folded --------------
    inv_z = pl.reciprocal(z, approx=True)                                    # one EUP op
    tgt = target_ref[...]
    tu = tgt[:, 0 * LANES:1 * LANES]
    tv = tgt[:, 1 * LANES:2 * LANES]
    du = xs * inv_z - tu                         # = sqrt(counts)*(u - target_u + EPS)
    dv = ys * inv_z - tv

    # --- 3. per-coordinate distances.  Lane 127 holds the stashed confidence (xs/ys are
    #        exactly 0 there), so its conf^2 contribution is subtracted back out. -----------
    conf_u = tu[:, LANES - 1:LANES]                                          # (TB, 1)
    conf_v = tv[:, LANES - 1:LANES]
    s_u = jnp.sum(du * du, axis=1, keepdims=True) - conf_u * conf_u
    s_v = jnp.sum(dv * dv, axis=1, keepdims=True) - conf_v * conf_v
    n_u = jnp.sqrt(jnp.maximum(s_u, 0.0))        # clamp guards tiny negatives from cancellation
    n_v = jnp.sqrt(jnp.maximum(s_v, 0.0))

    # --- 4. confidence weighting; final batch reduction happens in the wrapper -------------
    out_ref[...] = n_u * conf_u + n_v * conf_v


def pack_problem(W, b, cam, target, target_indexes, confidences):
    """One-time packing of everything that is constant across IK iterations.

    W : (D, 3*J) coord-major joint regressor, b : (3*J,) offsets (stand-ins for the SMPLH model),
    cam : (3,) [focal, cx, cy], target : (B, 2, J), target_indexes : (K,) int32,
    confidences : (B, 2, 1).
    """
    D = W.shape[0]
    J = W.shape[1] // 3
    B = target.shape[0]
    assert J < LANES, "kernel reserves lane 127 of each coordinate block for the confidence stash"

    TB, B_pad = _choose_tiling(B)
    f, cx, cy = cam[0], cam[1], cam[2]

    # per-joint multiplicity: exact equivalent of the index gather even with duplicate indexes
    counts = jnp.zeros((LANES,), jnp.float32).at[target_indexes].add(1.0)
    sqrt_c = jnp.sqrt(counts)
    scale_xy = f * sqrt_c[:J]

    W = W.astype(jnp.float32)
    b = jnp.reshape(b, (3 * J,)).astype(jnp.float32)
    W_pack = jnp.zeros((D, 3 * LANES), jnp.float32)
    b_pack = jnp.zeros((1, 3 * LANES), jnp.float32)
    W_pack = W_pack.at[:, 0 * LANES:0 * LANES + J].set(W[:, 0 * J:1 * J] * scale_xy)
    W_pack = W_pack.at[:, 1 * LANES:1 * LANES + J].set(W[:, 1 * J:2 * J] * scale_xy)
    W_pack = W_pack.at[:, 2 * LANES:2 * LANES + J].set(W[:, 2 * J:3 * J])
    b_pack = b_pack.at[0, 0 * LANES:0 * LANES + J].set(b[0 * J:1 * J] * scale_xy)
    b_pack = b_pack.at[0, 1 * LANES:1 * LANES + J].set(b[1 * J:2 * J] * scale_xy)
    b_pack = b_pack.at[0, 2 * LANES:2 * LANES + J].set(b[2 * J:3 * J])
    # padded depth lanes (incl. the conf-stash lane 127) kept at z = 1 so inv_z stays finite
    b_pack = b_pack.at[0, 2 * LANES + J:].set(1.0)

    conf = confidences.reshape(B, 2).astype(jnp.float32)
    tgt_pack = jnp.zeros((B_pad, 2 * LANES), jnp.float32)
    tgt_pack = tgt_pack.at[:B, 0 * LANES:0 * LANES + J].set(
        sqrt_c[:J] * (target[:, 0, :].astype(jnp.float32) - cx - EPS))
    tgt_pack = tgt_pack.at[:B, 1 * LANES:1 * LANES + J].set(
        sqrt_c[:J] * (target[:, 1, :].astype(jnp.float32) - cy - EPS))
    tgt_pack = tgt_pack.at[:B, 1 * LANES - 1].set(conf[:, 0])   # conf_u -> u-block lane 127
    tgt_pack = tgt_pack.at[:B, 2 * LANES - 1].set(conf[:, 1])   # conf_v -> v-block lane 127
    # padded batch rows stay all-zero (incl. conf lanes) and are discarded by the wrapper anyway

    return {
        "W": W_pack.astype(jnp.bfloat16),   # bf16 MXU weights (v7x MXU has no int path: keep bf16)
        "b": b_pack,
        "target": tgt_pack,
        "B": B, "B_pad": B_pad, "TB": TB, "D": D,
    }


def reprojection_loss_pallas(params, packed):
    """Per-IK-iteration forward pass: only `params` changes between calls."""
    B, B_pad, TB, D = packed["B"], packed["B_pad"], packed["TB"], packed["D"]
    G = B_pad // TB

    # accept bf16 params directly (optional review item: halves the params HBM stream)
    if params.dtype != jnp.bfloat16:
        params = params.astype(jnp.float32)
    if B_pad != B:                                  # skipped entirely when B % TB == 0
        params = jnp.pad(params, ((0, B_pad - B), (0, 0)))

    out = pl.pallas_call(
        _reproj_loss_kernel,
        out_shape=jax.ShapeDtypeStruct((B_pad, 1), jnp.float32),
        grid=(G,),
        in_specs=[
            pl.BlockSpec((D, 3 * LANES), lambda g: (0, 0)),      # W (bf16, same block every step)
            pl.BlockSpec((1, 3 * LANES), lambda g: (0, 0)),      # b
            pl.BlockSpec((TB, D), lambda g: (g, 0)),             # params tile
            pl.BlockSpec((TB, 2 * LANES), lambda g: (g, 0)),     # packed target tile
        ],
        out_specs=pl.BlockSpec((TB, 1), lambda g: (g, 0)),       # per-sample distances
        compiler_params=pltpu.CompilerParams(
            dimension_semantics=("parallel",)),                  # shards across v7x's 2 TCs
    )(packed["W"], packed["b"], params, packed["target"])

    # tiny final reduction; slicing to [:B] also discards the padded batch rows
    return jnp.sum(out[:B, 0])


def reprojection_loss_reference(cam, params, W, b, target, target_indexes, confidences):
    """Pure-JAX f32 mirror of the PyTorch forward (for verification)."""
    J = W.shape[1] // 3
    joints = params @ W + b                                                # (B, 3*J)
    x, y, z = joints[:, :J], joints[:, J:2 * J], joints[:, 2 * J:]
    f, cx, cy = cam[0], cam[1], cam[2]
    u = f * x / z + cx
    v = f * y / z + cy
    projection = jnp.stack([u, v], axis=-1)                                # (B, J, 2)
    tgt = target[:, :, target_indexes]                                     # (B, 2, K)
    eff = jnp.transpose(projection[:, target_indexes, :], (0, 2, 1))       # (B, 2, K)
    n = jnp.sqrt(jnp.sum((eff - tgt + EPS) ** 2, axis=-1, keepdims=True))  # (B, 2, 1)
    return jnp.sum(n * confidences)


if __name__ == "__main__":
    # --- deterministic setup, shapes implied by the module __init__ ------------------------
    num_body_joints, num_hand_joints, num_betas = 21, 15, 10
    D = 3 + num_body_joints * 3 + 2 * num_hand_joints * 3 + num_betas      # 166 IK params
    J = 1 + num_body_joints + 2 * num_hand_joints                          # 52 SMPL-H joints

    key = jax.random.PRNGKey(0)
    k1, k2, k3, k4, k5, k6, k7 = jax.random.split(key, 7)

    # synthetic deterministic "model" parameters
    W = (0.02 * jax.random.normal(k1, (D, 3 * J))).astype(jnp.float32)
    b = jnp.zeros((3 * J,), jnp.float32).at[2 * J:].set(5.0)               # keep depth z ~ 5

    cam = jnp.array([1000.0, 112.0, 112.0], dtype=jnp.float32)             # [focal, cx, cy]
    target_indexes = jnp.array([0, 5, 7, 12, 20, 33, 40, 51], dtype=jnp.int32)

    # two cases: tiny B (single grid step) and B=40 (multi-step grid + batch padding path)
    for B, kp, kt, kc in [(2, k2, k3, k4), (40, k5, k6, k7)]:
        params = jax.random.normal(kp, (B, D), dtype=jnp.float32)
        target = 100.0 * jax.random.normal(kt, (B, 2, J), dtype=jnp.float32)
        confidences = jax.random.uniform(kc, (B, 2, 1), dtype=jnp.float32)

        packed = pack_problem(W, b, cam, target, target_indexes, confidences)  # hoisted, once
        loss = jax.block_until_ready(reprojection_loss_pallas(params, packed))

        ref = reprojection_loss_reference(cam, params, W, b, target, target_indexes, confidences)
        # tolerance accounts for bf16 MXU inputs + approx reciprocal (both << 1% here)
        assert jnp.allclose(loss, ref, rtol=1e-2, atol=1e-1), (B, loss, ref)

    print("KERNEL_OK")
</pallas_src>

<mosaic_0001>
module attributes {stable_mosaic.version = 11 : i64} {
  func.func @_reproj_loss_kernel(%arg0: i32, %arg1: memref<166x384xbf16, #tpu.memory_space<vmem>>, %arg2: memref<1x384xf32, #tpu.memory_space<vmem>>, %arg3: memref<16x166xf32, #tpu.memory_space<vmem>>, %arg4: memref<16x256xf32, #tpu.memory_space<vmem>>, %arg5: memref<16x1xf32, #tpu.memory_space<vmem>>) attributes {dimension_semantics = [#tpu.dimension_semantics<parallel>], iteration_bounds = array<i64: 1>, scalar_prefetch = 0 : i64, scratch_operands = 0 : i64, tpu.core_type = #tpu.core_type<tc>, window_params = [{pipeline_mode = #tpu.pipeline_mode<synchronous>, transform_indices = @transform_0, window_bounds = array<i64: 166, 384>}, {pipeline_mode = #tpu.pipeline_mode<synchronous>, transform_indices = @transform_1, window_bounds = array<i64: 1, 384>}, {transform_indices = @transform_2, window_bounds = array<i64: 16, 166>}, {transform_indices = @transform_3, window_bounds = array<i64: 16, 256>}, {transform_indices = @transform_4, window_bounds = array<i64: 16, 1>}]} {
    %c0 = arith.constant 0 : index
    %c0_0 = arith.constant 0 : index
    %0 = vector.load %arg3[%c0, %c0_0] : memref<16x166xf32, #tpu.memory_space<vmem>>, vector<16x166xf32>
    %1 = arith.truncf %0 : vector<16x166xf32> to vector<16x166xbf16>
    %c0_1 = arith.constant 0 : index
    %c0_2 = arith.constant 0 : index
    %2 = vector.load %arg1[%c0_1, %c0_2] : memref<166x384xbf16, #tpu.memory_space<vmem>>, vector<166x384xbf16>
    %cst = arith.constant dense<0.000000e+00> : vector<16x384xf32>
    %3 = tpu.matmul %1, %2, %cst {dimension_numbers = #tpu.dot_dimension_numbers<[1], [0], [0], [1], [0, 0, 1, 1], [], []>} : vector<16x166xbf16>, vector<166x384xbf16>, vector<16x384xf32> -> vector<16x384xf32>
    %c0_3 = arith.constant 0 : index
    %c0_4 = arith.constant 0 : index
    %4 = vector.load %arg2[%c0_3, %c0_4] : memref<1x384xf32, #tpu.memory_space<vmem>>, vector<1x384xf32>
    %5 = vector.broadcast %4 : vector<1x384xf32> to vector<16x384xf32>
    %6 = arith.addf %3, %5 : vector<16x384xf32>
    %7 = vector.extract_strided_slice %6 {offsets = [0, 0], sizes = [16, 128], strides = [1, 1]} : vector<16x384xf32> to vector<16x128xf32>
    %8 = vector.extract_strided_slice %6 {offsets = [0, 128], sizes = [16, 128], strides = [1, 1]} : vector<16x384xf32> to vector<16x128xf32>
    %9 = vector.extract_strided_slice %6 {offsets = [0, 256], sizes = [16, 128], strides = [1, 1]} : vector<16x384xf32> to vector<16x128xf32>
    %10 = tpu.reciprocal %9 {approx = true} : vector<16x128xf32> -> vector<16x128xf32>
    %c0_5 = arith.constant 0 : index
    %c0_6 = arith.constant 0 : index
    %11 = vector.load %arg4[%c0_5, %c0_6] : memref<16x256xf32, #tpu.memory_space<vmem>>, vector<16x256xf32>
    %12 = vector.extract_strided_slice %11 {offsets = [0, 0], sizes = [16, 128], strides = [1, 1]} : vector<16x256xf32> to vector<16x128xf32>
    %13 = vector.extract_strided_slice %11 {offsets = [0, 128], sizes = [16, 128], strides = [1, 1]} : vector<16x256xf32> to vector<16x128xf32>
    %14 = arith.mulf %7, %10 : vector<16x128xf32>
    %15 = arith.subf %14, %12 : vector<16x128xf32>
    %16 = arith.mulf %8, %10 : vector<16x128xf32>
    %17 = arith.subf %16, %13 : vector<16x128xf32>
    %18 = vector.extract_strided_slice %12 {offsets = [0, 127], sizes = [16, 1], strides = [1, 1]} : vector<16x128xf32> to vector<16x1xf32>
    %19 = vector.extract_strided_slice %13 {offsets = [0, 127], sizes = [16, 1], strides = [1, 1]} : vector<16x128xf32> to vector<16x1xf32>
    %20 = arith.mulf %15, %15 : vector<16x128xf32>
    %cst_7 = arith.constant dense<0.000000e+00> : vector<16xf32>
    %21 = vector.multi_reduction <add>, %20, %cst_7 [1] : vector<16x128xf32> to vector<16xf32>
    %22 = vector.shape_cast %21 : vector<16xf32> to vector<16x1xf32>
    %23 = arith.mulf %18, %18 : vector<16x1xf32>
    %24 = arith.subf %22, %23 : vector<16x1xf32>
    %25 = arith.mulf %17, %17 : vector<16x128xf32>
    %cst_8 = arith.constant dense<0.000000e+00> : vector<16xf32>
    %26 = vector.multi_reduction <add>, %25, %cst_8 [1] : vector<16x128xf32> to vector<16xf32>
    %27 = vector.shape_cast %26 : vector<16xf32> to vector<16x1xf32>
    %28 = arith.mulf %19, %19 : vector<16x1xf32>
    %29 = arith.subf %27, %28 : vector<16x1xf32>
    %cst_9 = arith.constant 0.000000e+00 : f32
    %30 = vector.broadcast %cst_9 : f32 to vector<16x1xf32>
    %31 = arith.maximumf %24, %30 : vector<16x1xf32>
    %32 = math.sqrt %31 : vector<16x1xf32>
    %cst_10 = arith.constant 0.000000e+00 : f32
    %33 = vector.broadcast %cst_10 : f32 to vector<16x1xf32>
    %34 = arith.maximumf %29, %33 : vector<16x1xf32>
    %35 = math.sqrt %34 : vector<16x1xf32>
    %36 = arith.mulf %32, %18 : vector<16x1xf32>
    %37 = arith.mulf %35, %19 : vector<16x1xf32>
    %38 = arith.addf %36, %37 : vector<16x1xf32>
    %c0_11 = arith.constant 0 : index
    %c0_12 = arith.constant 0 : index
    %39 = vector.load %arg5[%c0_11, %c0_12] : memref<16x1xf32, #tpu.memory_space<vmem>>, vector<16x1xf32>
    tpu.vector_store %arg5[%c0_11, %c0_12], %38 {strides = array<i32>} : memref<16x1xf32, #tpu.memory_space<vmem>>, vector<16x1xf32>,
    return
  }
  func.func @transform_0(%arg0: i32) -> (i32, i32) {
    %c0_i32 = arith.constant 0 : i32
    %c0_i32_0 = arith.constant 0 : i32
    %c0_i32_1 = arith.constant 0 : i32
    return %c0_i32, %c0_i32_0 : i32, i32
  }
  func.func @transform_1(%arg0: i32) -> (i32, i32) {
    %c0_i32 = arith.constant 0 : i32
    %c0_i32_0 = arith.constant 0 : i32
    %c0_i32_1 = arith.constant 0 : i32
    return %c0_i32, %c0_i32_0 : i32, i32
  }
  func.func @transform_2(%arg0: i32) -> (i32, i32) {
    %c0_i32 = arith.constant 0 : i32
    %c0_i32_0 = arith.constant 0 : i32
    return %arg0, %c0_i32 : i32, i32
  }
  func.func @transform_3(%arg0: i32) -> (i32, i32) {
    %c0_i32 = arith.constant 0 : i32
    %c0_i32_0 = arith.constant 0 : i32
    return %arg0, %c0_i32 : i32, i32
  }
  func.func @transform_4(%arg0: i32) -> (i32, i32) {
    %c0_i32 = arith.constant 0 : i32
    %c0_i32_0 = arith.constant 0 : i32
    return %arg0, %c0_i32 : i32, i32
  }
}

</mosaic_0001>

<bundles_post_ra>
// kernel: tpu_custom_call.1
= control target key start
LH: loop header
LB: loop body
LE: loop exit
PB: predicated region body
PF: predicated region fallthrough
CT: control target
= control target key end

     0   :  { %9 = vsyncpa [#allocation3], 0  ;;  %s757_s0 = inlined_call_operand.hbm [shape: bf16[166,384], index: 0, kind: input, shape index: {}]   ;;  %s758_s1 = inlined_call_operand.vmem [shape: f32[1,384], index: 1, kind: input, shape index: {}]   ;;  %s759_s2 = inlined_call_operand.hbm [shape: f32[16,166], index: 2, kind: input, shape index: {}]   ;;  %s760_s3 = inlined_call_operand.hbm [shape: f32[16,256], index: 3, kind: input, shape index: {}]   ;;  %s761_s4 = inlined_call_operand.vmem [shape: f32[16,1], index: 4, kind: output, shape index: {}]  }
   0x1   :  { %10 = vsyncpa [#allocation5], 0  ;;  %s649_s15 = smov [#allocation4]   ;;  %s579_s19 = scalar_lea.hbm %s759_s2, 512 }
   0x2   :  { %s30_s16 = sshll.u32 %s649_s15, 4  ;;  %p580_p0 = scmp.ne.s32.totalorder %s759_s2, %s579_s19  ;;  %s31_s16 = int_to_ptr.vmem [resolvable:$true] %s30_s16 }
   0x3   :  { %p583_p1 = scmp.lt.u32.totalorder %s579_s19, %s759_s2 }
   0x5   :  { %p585_p2 = pnand %p583_p1, %p580_p0 }
   0x7   :  { %588 = shalt.err (!%p585_p2)
}
   0x8   :  { %s589_s24 = scalar_lea.vmem %s31_s16, 512  ;;  %p594_p4 = scmp.lt.s32.totalorder %s31_s16, %s31_s16 }
   0x9   :  { %p590_p3 = scmp.ne.s32.totalorder %s31_s16, %s589_s24  ;;  %p595_p5 = scmp.lt.s32.totalorder %s589_s24, %s589_s24 }
   0xb   :  { %p596_p6 = por %p595_p5, %p594_p4 }
   0xd   :  { %p597_p7 = pnand %p596_p6, %p590_p3 }
   0xf   :  { %600 = shalt.err (!%p597_p7)
}
  0x10   :  { %s650_s25 = smov 256   ;;  %s651_s26 = smov 16  }
  0x11   :  { %36 = dma.hbm_to_vmem [thread:$0]  %s759_s2, 512, %s31_s16, [#allocation5], %s650_s25, %s650_s25, %s651_s26  }
  0x12   :  { %s652_s29 = smov [#allocation2]   ;;  %s601_s7 = scalar_lea.hbm %s757_s0, 4032 }
  0x13   :  { %s16_s30 = sshll.u32 %s652_s29, 4  ;;  %p602_p8 = scmp.ne.s32.totalorder %s757_s0, %s601_s7  ;;  %s17_s30 = int_to_ptr.vmem [resolvable:$true] %s16_s30 }
  0x14   :  { %p605_p9 = scmp.lt.u32.totalorder %s601_s7, %s757_s0 }
  0x16   :  { %p607_p10 = pnand %p605_p9, %p602_p8 }
  0x18   :  { %610 = shalt.err (!%p607_p10)
}
  0x19   :  { %s611_s12 = scalar_lea.vmem %s17_s30, 4032  ;;  %p616_p12 = scmp.lt.s32.totalorder %s17_s30, %s17_s30 }
  0x1a   :  { %p612_p11 = scmp.ne.s32.totalorder %s17_s30, %s611_s12  ;;  %p617_p13 = scmp.lt.s32.totalorder %s611_s12, %s611_s12 }
  0x1c   :  { %p618_p0 = por %p617_p13, %p616_p12 }
  0x1e   :  { %p619_p1 = pnand %p618_p0, %p612_p11 }
  0x20   :  { %622 = shalt.err (!%p619_p1)
}
  0x21   :  { %s653_s2 = smov 192   ;;  %s654_s13 = smov 12  }
  0x22   :  { %22 = dma.hbm_to_vmem [thread:$0]  %s757_s0, 4032, %s17_s30, [#allocation3], %s653_s2, %s653_s2, %s654_s13  }
  0x23   :  { %s655_s16 = smov [#allocation6]   ;;  %s623_s20 = scalar_lea.hbm %s760_s3, 512 }
  0x24   :  { %s42_s17 = sshll.u32 %s655_s16, 4  ;;  %p624_p2 = scmp.ne.s32.totalorder %s760_s3, %s623_s20  ;;  %s43_s17 = int_to_ptr.vmem [resolvable:$true] %s42_s17 }
  0x25   :  { %p627_p3 = scmp.lt.u32.totalorder %s623_s20, %s760_s3 }
  0x27   :  { %p629_p4 = pnand %p627_p3, %p624_p2 }
  0x29   :  { %632 = shalt.err (!%p629_p4)
}
  0x2a   :  { %s633_s27 = scalar_lea.vmem %s43_s17, 512  ;;  %p638_p6 = scmp.lt.s32.totalorder %s43_s17, %s43_s17 }
  0x2b   :  { %p634_p5 = scmp.ne.s32.totalorder %s43_s17, %s633_s27  ;;  %p639_p7 = scmp.lt.s32.totalorder %s633_s27, %s633_s27 }
  0x2d   :  { %p640_p8 = por %p639_p7, %p638_p6 }
  0x2f   :  { %p641_p9 = pnand %p640_p8, %p634_p5 }
  0x31   :  { %644 = shalt.err (!%p641_p9)
}
  0x32   :  { %48 = dma.hbm_to_vmem [thread:$0]  %s760_s3, 512, %s43_s17, [#allocation5], %s650_s25, %s650_s25, %s651_s26  }
  0x33   :  { %645 = dma.done.wait [#allocation3], 4032  }
  0x34   :  { %646 = vsyncadd [#allocation3], 4294963264 }
  0x35   :  { %647 = dma.done.wait [#allocation5], 1024  }
  0x36   :  { %648 = vsyncadd [#allocation5], 4294966272  ;;  %v656_v0 = vmov 0   ;;  %v524_v1 = vld [vmem:[#allocation2 + $0x8] ss:$12 sps:$4 sm:$0xff]   ;;  %vm292_vm0 = vcmask 310272   ;;  %v109_v43 = vlaneseq }
  0x37   :  { %349 = vmatprep.subr.bf16.mxu1 %v656_v0  ;;  %v525_v2 = vld [vmem:[#allocation2 + $0x20] ss:$12 sps:$4 sm:$0xff]   ;;  %v526_v3 = vld [vmem:[#allocation2 + $0x4] ss:$12 sps:$4 sm:$0xff]   ;;  %v530_v5 = vld [vmem:[#allocation2 + $0x1c] ss:$12 sps:$4 sm:$0xff]  }
  0x38   :  { %350 = vmatpush1.bf16.msra.mxu1 %v524_v1  ;;  %v528_v4 = vld [vmem:[#allocation2] ss:$12 sps:$4 sm:$0xff]   ;;  %306 = vmatprep.subr.bf16.mxu0 %v526_v3  ;;  %v532_v6 = vld [vmem:[#allocation2 + $0x18] ss:$12 sps:$4 sm:$0xff]   ;;  %v533_v9 = vld [vmem:[#allocation2 + $0x50] ss:$12 sps:$4 sm:$0xff]  }
  0x39   :  { %351 = vmatprep.subr.bf16.mxu1 %v656_v0  ;;  %307 = vmatpush1.bf16.msra.mxu0 %v528_v4  ;;  %v529_v7 = vld [vmem:[#allocation2 + $0x38] ss:$12 sps:$4 sm:$0xff]   ;;  %v534_v8 = vld [vmem:[#allocation2 + $0x34] ss:$12 sps:$4 sm:$0xff]   ;;  %v536_v10 = vld [vmem:[#allocation2 + $0x30] ss:$12 sps:$4 sm:$0xff]  }
  0x3a   :  { %308 = vmatprep.subr.bf16.mxu0 %v530_v5  ;;  %v538_v11 = vld [vmem:[#allocation2 + $0x4c] ss:$12 sps:$4 sm:$0xff]   ;;  %v540_v12 = vld [vmem:[#allocation2 + $0x48] ss:$12 sps:$4 sm:$0xff]   ;;  %v542_v14 = vld [vmem:[#allocation2 + $0x64] ss:$12 sps:$4 sm:$0xff]  }
  0x3b   :  { %v537_v13 = vld [vmem:[#allocation2 + $0x68] ss:$12 sps:$4 sm:$0xff]   ;;  %v541_v15 = vld [vmem:[#allocation2 + $0x80] ss:$12 sps:$4 sm:$0xff]   ;;  %v545_v18 = vld [vmem:[#allocation2 + $0x98] ss:$12 sps:$4 sm:$0xff]  }
  0x3c   :  { %352 = vmatpush1.bf16.msra.mxu1 %v525_v2  ;;  %v544_v16 = vld [vmem:[#allocation2 + $0x60] ss:$12 sps:$4 sm:$0xff]   ;;  %v546_v17 = vld [vmem:[#allocation2 + $0x7c] ss:$12 sps:$4 sm:$0xff]   ;;  %v548_v19 = vld [vmem:[#allocation2 + $0x78] ss:$12 sps:$4 sm:$0xff]  }
  0x3d   :  { %353 = vmatprep.subr.bf16.mxu1 %v656_v0  ;;  %309 = vmatpush1.bf16.msra.mxu0 %v532_v6  ;;  %v550_v20 = vld [vmem:[#allocation2 + $0x94] ss:$12 sps:$4 sm:$0xff]   ;;  %v60_v21 = vld [vmem:[#allocation4 + $0x8] sm:$0xff]  ;;  %v552_v23 = vld [vmem:[#allocation2 + $0x90] ss:$12 sps:$4 sm:$0xff]   ;;  %vm296_vm1 = vcmask 1042432  }
  0x3e   :  { %310 = vmatprep.subr.bf16.mxu0 %v534_v8  ;;  %v62_v22 = vld [vmem:[#allocation4 + $0x18] sm:$0xff]  ;;  %v549_v25 = vld [vmem:[#allocation2 + $0xb0] ss:$12 sps:$4 sm:$0xff]   ;;  %v560_v30 = vld [vmem:[#allocation2 + $0xc0] ss:$12 sps:$4 sm:$0xff]   ;;  %v110_v44 = vshrl.u32 %v109_v43, 7 }
  0x3f   :  { %v64_v24 = vpack.c.bf16 %v62_v22, %v60_v21  ;;  %v554_v26 = vld [vmem:[#allocation2 + $0xac] ss:$12 sps:$4 sm:$0xff]   ;;  %v556_v27 = vld [vmem:[#allocation2 + $0xa8] ss:$12 sps:$4 sm:$0xff]   ;;  %v558_v29 = vld [vmem:[#allocation2 + $0xc4] ss:$12 sps:$4 sm:$0xff]  }
  0x40   :  { %354 = vmatpush1.bf16.msra.mxu1 %v529_v7  ;;  %v553_v28 = vld [vmem:[#allocation2 + $0xc8] ss:$12 sps:$4 sm:$0xff]   ;;  %v557_v31 = vld [vmem:[#allocation2 + $0xe0] ss:$12 sps:$4 sm:$0xff]   ;;  %v564_v35 = vld [vmem:[#allocation2 + $0xd8] ss:$12 sps:$4 sm:$0xff]  }
  0x41   :  { %355 = vmatprep.subr.bf16.mxu1 %v656_v0  ;;  %311 = vmatpush1.bf16.msra.mxu0 %v536_v10  ;;  %v562_v32 = vld [vmem:[#allocation2 + $0xdc] ss:$12 sps:$4 sm:$0xff]   ;;  %v561_v33 = vld [vmem:[#allocation2 + $0xf8] ss:$0 sps:$4 sm:$0x77]   ;;  %v61_v37 = vld [vmem:[#allocation4 + $0x10] sm:$0xff] }
  0x42   :  { %312 = vmatprep.subr.bf16.mxu0 %v538_v11  ;;  %514 = vmatprep.mubr.msk.bf16.mxu1 %vm292_vm0, %v64_v24  ;;  %v105_v34 = vld [vmem:[#allocation2 + $0xf0] sm:$0x77]  ;;  %v59_v36 = vld [vmem:[#allocation4] sm:$0xff]  ;;  %v304_v40 = vsel %vm296_vm1, %v561_v33, 0  ;;  %v119_v45 = vsub.s32 2, %v110_v44  ;;  %v111_v52 = vsub.s32 0, %v110_v44 }
  0x43   :  { %513 = vmatprep.mubr.msk.bf16.mxu0 %vm292_vm0, %v64_v24  ;;  %v510_v38 = vcombine.high %v105_v34, %v105_v34  ;;  %v509_v39 = vcombine.low %v105_v34, %v105_v34  ;;  %v63_v41 = vpack.c.bf16 %v61_v37, %v59_v36  ;;  %v107_v46 = vld [vmem:[%s758_s1] sm:$0x7]  ;;  %v115_v53 = vsub.s32 1, %v110_v44  ;;  %v393_v1 = vld [vmem:[#allocation6 + $0x8] sm:$0xff]  ;;  %v739_v8 = vld [vmem:[#allocation6 + $0x18] sm:$0xff]  ;;  %s657_s1 = smov 1  }
  0x44   :  { %356 = vmatpush1.bf16.msra.mxu1 %v533_v9  ;;  %v120_v47 = vrot.slane %v107_v46, %v119_v45  ;;  %v112_v59 = vrot.slane %v107_v46, %v111_v52  ;;  %v392_v2 = vld [vmem:[#allocation6] sm:$0xff]  ;;  %v741_v9 = vld [vmem:[#allocation6 + $0x10] sm:$0xff]  ;;  %vm470_vm10 = vcmask 7168  }
  0x45   :  { %357 = vmatprep.subr.bf16.mxu1 %v656_v0  ;;  %313 = vmatpush1.bf16.msra.mxu0 %v540_v12  ;;  %v298_v42 = vsel %vm296_vm1, %v509_v39, 0  ;;  %v116_v60 = vrot.slane %v107_v46, %v115_v53  ;;  %v410_v21 = vmul.f32 %v392_v2, %v392_v2 }
  0x46   :  { %314 = vmatprep.subr.bf16.mxu0 %v542_v14 }
  0x48   :  { %358 = vmatpush1.bf16.msra.mxu1 %v537_v13 }
  0x49   :  { %359 = vmatprep.subr.bf16.mxu1 %v656_v0  ;;  %315 = vmatpush1.bf16.msra.mxu0 %v544_v16 }
  0x4a   :  { %316 = vmatprep.subr.bf16.mxu0 %v546_v17 }
  0x4c   :  { %360 = vmatpush1.bf16.msra.mxu1 %v541_v15 }
  0x4d   :  { %361 = vmatprep.subr.bf16.mxu1 %v656_v0  ;;  %317 = vmatpush1.bf16.msra.mxu0 %v548_v19 }
  0x4e   :  { %318 = vmatprep.subr.bf16.mxu0 %v550_v20  ;;  %v420_v20 = vmul.f32 %v393_v1, %v393_v1 }
  0x50   :  { %362 = vmatpush1.bf16.msra.mxu1 %v545_v18 }
  0x51   :  { %363 = vmatprep.subr.bf16.mxu1 %v656_v0  ;;  %319 = vmatpush1.bf16.msra.mxu0 %v552_v23 }
  0x52   :  { %320 = vmatprep.subr.bf16.mxu0 %v554_v26  ;;  %v421_v26 = vmul.f32 %v739_v8, %v739_v8 }
  0x54   :  { %364 = vmatpush1.bf16.msra.mxu1 %v549_v25 }
  0x55   :  { %365 = vmatprep.subr.bf16.mxu1 %v656_v0  ;;  %321 = vmatpush1.bf16.msra.mxu0 %v556_v27  ;;  %v411_v27 = vmul.f32 %v741_v9, %v741_v9 }
  0x56   :  { %322 = vmatprep.subr.bf16.mxu0 %v558_v29 }
  0x58   :  { %366 = vmatpush1.bf16.msra.mxu1 %v553_v28 }
  0x59   :  { %367 = vmatprep.subr.bf16.mxu1 %v656_v0  ;;  %323 = vmatpush1.bf16.msra.mxu0 %v560_v30 }
  0x5a   :  { %324 = vmatprep.subr.bf16.mxu0 %v562_v32 }
  0x5c   :  { %368 = vmatpush1.bf16.msra.mxu1 %v557_v31 }
  0x5d   :  { %369 = vmatprep.subr.bf16.mxu1 %v656_v0  ;;  %325 = vmatpush1.bf16.msra.mxu0 %v564_v35 }
  0x5e   :  { %512 = vmatprep.subr.msk.bf16.mxu0 %vm296_vm1, %v510_v38 }
  0x60   :  { %370 = vmatpush1.bf16.msra.mxu1 %v304_v40 }
  0x61   :  { %327 = vmatpush1.bf16.msra.mxu0 %v298_v42 }
  0x63   :  { %382 = vmatmul.mubr.bf16.vlgmr.msra.gmra.mrb[0].mxu1 %v63_v41 }
  0x64   :  { %339 = vmatmul.mubr.bf16.vlgmr.msra.gmra.mrb[0].mxu0 %v63_v41 }
 0x136   :  { %v383_v48 = vpop.f32.mrb[0].mxu1 }
 0x137   :  { %v384_v49 = vadd.f32 %v383_v48, %v120_v47  ;;  %v385_v50 = vpop.f32.mrb[1].mxu1  ;;  %v340_v56 = vpop.f32.mrb[0].mxu0 }
 0x138   :  { %v386_v51 = vpop.f32.mrb[2].mxu1  ;;  %v342_v57 = vpop.f32.mrb[1].mxu0  ;;  %v341_v62 = vadd.f32 %v340_v56, %v112_v59 }
 0x139   :  { %567 = vrcp.f32 %v384_v49  ;;  %v387_v54 = vadd.f32 %v386_v51, %v120_v47  ;;  %v388_v55 = vpop.f32.mrb[3].mxu1  ;;  %v344_v58 = vpop.f32.mrb[2].mxu0  ;;  %v343_v63 = vadd.f32 %v342_v57, %v116_v60 }
 0x13a   :  { %v346_v61 = vpop.f32.mrb[3].mxu0  ;;  %v345_v3 = vadd.f32 %v344_v58, %v112_v59 }
 0x13b   :  { %569 = vrcp.f32 %v387_v54  ;;  %v347_v4 = vadd.f32 %v346_v61, %v116_v60 }
 0x143   :  { %v568_v0 = vpop.eup %567 }
 0x144   :  { %v400_v5 = vmul.f32 %v568_v0, %v343_v63  ;;  %v396_v6 = vmul.f32 %v568_v0, %v341_v62 }
 0x145   :  { %v570_v7 = vpop.eup %569 }
 0x146   :  { %v397_v10 = vmul.f32 %v570_v7, %v345_v3  ;;  %v401_v11 = vmul.f32 %v570_v7, %v347_v4  ;;  %v402_v12 = vsub.f32 %v400_v5, %v393_v1  ;;  %v398_v13 = vsub.f32 %v396_v6, %v392_v2 }
 0x148   :  { %v414_v14 = vmul.f32 %v402_v12, %v402_v12  ;;  %v404_v15 = vmul.f32 %v398_v13, %v398_v13  ;;  %v403_v16 = vsub.f32 %v401_v11, %v739_v8  ;;  %v399_v17 = vsub.f32 %v397_v10, %v741_v9 }
 0x14a   :  { %416 = vadd.xlane.f32.xlu1 %v414_v14  ;;  %406 = vadd.xlane.f32.xlu0 %v404_v15  ;;  %v415_v18 = vmul.f32 %v403_v16, %v403_v16  ;;  %v405_v19 = vmul.f32 %v399_v17, %v399_v17 }
 0x14e   :  { %418 = vadd.xlane.f32.xlu1 %v415_v18  ;;  %408 = vadd.xlane.f32.xlu0 %v405_v19 }
 0x1d7   :  { %v417_v22 = vpop.xlane.xlu1 %416  ;;  %v407_v23 = vpop.xlane.xlu0 %406 }
 0x1d8   :  { %v422_v24 = vsub.f32 %v417_v22, %v420_v20  ;;  %v412_v25 = vsub.f32 %v407_v23, %v410_v21 }
 0x1da   :  { %v440_v28 = vmax.f32 %v422_v24, 0.0  ;;  %v424_v29 = vmax.f32 %v412_v25, 0.0 }
 0x1db   :  { %v419_v30 = vpop.xlane.xlu1 %418  ;;  %v409_v31 = vpop.xlane.xlu0 %408 }
 0x1dc   :  { %571 = vrsqrt.f32 %v440_v28  ;;  %v423_v32 = vsub.f32 %v419_v30, %v421_v26  ;;  %v413_v33 = vsub.f32 %v409_v31, %v411_v27  ;;  %vm444_vm2 = vcmp.eq.f32.partialorder %v440_v28, inf }
 0x1dd   :  { %573 = vrsqrt.f32 %v424_v29  ;;  %v447_v40 = vand.u32 2147483648, %v440_v28  ;;  %vm428_vm3 = vcmp.eq.f32.partialorder %v424_v29, inf  ;;  %v431_v41 = vand.u32 2147483648, %v424_v29 }
 0x1de   :  { %v441_v34 = vmax.f32 %v423_v32, 0.0  ;;  %v425_v35 = vmax.f32 %v413_v33, 0.0  ;;  %vm446_vm4 = vcmp.eq.f32.partialorder %v440_v28, 0.0  ;;  %vm430_vm5 = vcmp.eq.f32.partialorder %v424_v29, 0.0 }
 0x1e0   :  { %575 = vrsqrt.f32 %v441_v34  ;;  %vm451_vm6 = vcmp.eq.f32.partialorder %v441_v34, inf  ;;  %v454_v52 = vand.u32 2147483648, %v441_v34  ;;  %vm435_vm7 = vcmp.eq.f32.partialorder %v425_v35, inf }
 0x1e1   :  { %577 = vrsqrt.f32 %v425_v35  ;;  %v438_v53 = vand.u32 2147483648, %v425_v35  ;;  %vm453_vm8 = vcmp.eq.f32.partialorder %v441_v34, 0.0  ;;  %vm437_vm9 = vcmp.eq.f32.partialorder %v425_v35, 0.0 }
 0x1e6   :  { %v572_v36 = vpop.eup %571 }
 0x1e7   :  { %v574_v37 = vpop.eup %573  ;;  %v443_v38 = vmul.f32 %v572_v36, %v440_v28 }
 0x1e8   :  { %v427_v39 = vmul.f32 %v574_v37, %v424_v29 }
 0x1e9   :  { %v445_v42 = vsel %vm444_vm2, %v440_v28, %v443_v38 }
 0x1ea   :  { %v576_v43 = vpop.eup %575  ;;  %v429_v44 = vsel %vm428_vm3, %v424_v29, %v427_v39  ;;  %v448_v45 = vsel %vm446_vm4, %v447_v40, %v445_v42 }
 0x1eb   :  { %v578_v46 = vpop.eup %577  ;;  %v432_v47 = vsel %vm430_vm5, %v431_v41, %v429_v44  ;;  %v458_v48 = vmul.f32 %v448_v45, %v393_v1  ;;  %v450_v49 = vmul.f32 %v576_v43, %v441_v34 }
 0x1ec   :  { %v456_v50 = vmul.f32 %v432_v47, %v392_v2  ;;  %v434_v51 = vmul.f32 %v578_v46, %v425_v35 }
 0x1ed   :  { %v452_v54 = vsel %vm451_vm6, %v441_v34, %v450_v49 }
 0x1ee   :  { %v460_v55 = vadd.f32 %v458_v48, %v456_v50  ;;  %v436_v56 = vsel %vm435_vm7, %v425_v35, %v434_v51  ;;  %v455_v57 = vsel %vm453_vm8, %v454_v52, %v452_v54 }
 0x1ef   :  { %v439_v58 = vsel %vm437_vm9, %v438_v53, %v436_v56  ;;  %v459_v59 = vmul.f32 %v455_v57, %v739_v8 }
 0x1f0   :  { %464 = vrot.lane.b32.xlu0 %v460_v55, %s657_s1  ;;  %v457_v60 = vmul.f32 %v439_v58, %v741_v9 }
 0x1f2   :  { %v461_v61 = vadd.f32 %v459_v59, %v457_v60 }
 0x1f4   :  { %466 = vrot.lane.b32.xlu1 %v461_v61, %s657_s1 }
 0x262   :  { %v465_v62 = vpop.permute.xlu0 %464 }
 0x263   :  { %471 = vst.msk [vmem:[%s761_s4] sm:$0xff] %vm470_vm10, %v465_v62 }
 0x266   :  { %v467_v63 = vpop.permute.xlu1 %466 }
 0x267   :  { %472 = vst.msk [vmem:[%s761_s4 + $0x8] sm:$0xff] %vm470_vm10, %v467_v63 }
 0x268   :  { %477 = vsyncpa [#allocation3], 1 }
 0x269   :  { %478 = vsyncpa [#allocation5], 1 }

</bundles_post_ra>
